<compile_context>
chip_gen: v6e
topology: v6e:2x2x1
jax: 0.10.0
libtpu: 0.0.40
codegen_flags: <defaults>
</compile_context>

<pallas_src>
import functools

import jax
import jax.numpy as jnp
from jax import lax
from jax.experimental import pallas as pl
from jax.experimental.pallas import tpu as pltpu


IN_DIM = 8
HIDDEN = 128
N_ACTIONS = 4
HEAD_DIM = N_ACTIONS + 1  # fused action logits (4 rows) + state value (1 row)
LANE = 128
MAX_BLOCK_B = 2048


def _actor_critic_kernel(x_ref, w1_ref, b1_ref, wh_ref, bh_ref, out_ref):
    # x:  (8, TB)    w1: (128, 8)   b1: (128, 1)
    # wh: (5, 128)   bh: (5, 1)     out: (5, TB) = [probs rows 0..3 | value row 4]
    x = x_ref[...]

    # affine + ReLU, transposed so the batch dim is the MXU-N / lane dim
    h = jnp.dot(w1_ref[...], x, preferred_element_type=jnp.float32) + b1_ref[...]
    h = jnp.maximum(h, 0.0)

    # fused action + value head: one MXU pass
    heads = jnp.dot(wh_ref[...], h, preferred_element_type=jnp.float32) + bh_ref[...]

    # sublane-masked softmax over the first N_ACTIONS rows; value row passes through
    row = lax.broadcasted_iota(jnp.int32, heads.shape, 0)
    is_act = row < N_ACTIONS
    m = jnp.max(jnp.where(is_act, heads, -jnp.inf), axis=0, keepdims=True)
    e = jnp.exp(jnp.where(is_act, heads - m, 0.0))
    e = jnp.where(is_act, e, 0.0)
    s = jnp.sum(e, axis=0, keepdims=True)
    r = pl.reciprocal(s, approx=True)        # EUP vrcp (frees VALU slots)
    r = r * (2.0 - s * r)                    # one Newton step -> ~1e-7 rel err

    # single lane-dense store: probs in rows 0..3, raw value in row 4
    out_ref[...] = jnp.where(is_act, e * r, heads)


def _round_up(x, m):
    return ((x + m - 1) // m) * m


def _default_block_b(B):
    """Lane-aligned batch tile; >=2 grid steps when possible (v7x megacore)."""
    b_lanes = _round_up(B, LANE)
    if b_lanes <= LANE:
        return LANE
    half = _round_up(b_lanes // 2, LANE)
    return max(LANE, min(half, MAX_BLOCK_B))


@functools.partial(jax.jit, static_argnames=("block_b",))
def _forward_padded(state_t, w1, b1, wh, bh, block_b):
    """state_t: (IN_DIM, b_pad) with b_pad a multiple of block_b."""
    b_pad = state_t.shape[1]
    grid_b = b_pad // block_b

    flops = 2 * b_pad * (IN_DIM * HIDDEN + HIDDEN * HEAD_DIM)
    bytes_accessed = 4 * (
        b_pad * IN_DIM + b_pad * HEAD_DIM
        + HIDDEN * IN_DIM + HIDDEN + HEAD_DIM * HIDDEN + HEAD_DIM
    )
    cost = pl.CostEstimate(
        flops=flops,
        transcendentals=b_pad * (N_ACTIONS + 1),
        bytes_accessed=bytes_accessed,
    )

    return pl.pallas_call(
        _actor_critic_kernel,
        out_shape=jax.ShapeDtypeStruct((HEAD_DIM, b_pad), jnp.float32),
        grid=(grid_b,),
        in_specs=[
            pl.BlockSpec((IN_DIM, block_b), lambda i: (0, i)),    # streamed input
            pl.BlockSpec((HIDDEN, IN_DIM), lambda i: (0, 0)),     # VMEM-resident
            pl.BlockSpec((HIDDEN, 1), lambda i: (0, 0)),
            pl.BlockSpec((HEAD_DIM, HIDDEN), lambda i: (0, 0)),
            pl.BlockSpec((HEAD_DIM, 1), lambda i: (0, 0)),
        ],
        out_specs=pl.BlockSpec((HEAD_DIM, block_b), lambda i: (0, i)),
        compiler_params=pltpu.CompilerParams(
            dimension_semantics=("parallel",),   # shards batch over v7x's 2 TCs
        ),
        cost_estimate=cost,
    )(state_t, w1, b1, wh, bh)


def actor_critic_forward(state, packed_params, block_b=None):
    """Pallas forward.

    state: (B, 8) float32.  Returns (action_probs (B, 4), state_value (B, 1)).
    For perf-critical consumers the fused lane-dense (5, B) buffer from
    `_forward_padded` can be used directly to skip the final transpose/slice.
    """
    w1, b1, wh, bh = packed_params
    B = state.shape[0]

    if block_b is None:
        block_b = _default_block_b(B)
    block_b = _round_up(block_b, LANE)

    b_pad = _round_up(B, block_b)
    state_t = jnp.transpose(state.astype(jnp.float32))       # (8, B), one cheap XLA op
    if b_pad != B:
        # Zero padding only when the tile doesn't divide B; zero columns are
        # harmless (finite softmax) and get dropped below.
        state_t = jnp.pad(state_t, ((0, 0), (0, b_pad - B)))

    out_t = _forward_padded(state_t, w1, b1, wh, bh, block_b)  # (5, b_pad)

    probs = jnp.transpose(out_t[:N_ACTIONS, :B])               # (B, 4)
    value = jnp.transpose(out_t[N_ACTIONS:, :B])                # (B, 1)
    return probs, value


def init_params(key):
    """nn.Linear-style init (uniform +/- 1/sqrt(fan_in)), torch (out, in) layout."""
    k1, k2, k3, k4, k5, k6 = jax.random.split(key, 6)

    def unif(k, shape, fan_in):
        bound = 1.0 / jnp.sqrt(jnp.float32(fan_in))
        return jax.random.uniform(k, shape, jnp.float32, -bound, bound)

    W1 = unif(k1, (HIDDEN, IN_DIM), IN_DIM)    # affine.weight
    b1 = unif(k2, (HIDDEN,), IN_DIM)           # affine.bias
    Wa = unif(k3, (N_ACTIONS, HIDDEN), HIDDEN) # action_layer.weight
    ba = unif(k4, (N_ACTIONS,), HIDDEN)        # action_layer.bias
    Wv = unif(k5, (1, HIDDEN), HIDDEN)         # value_layer.weight
    bv = unif(k6, (1,), HIDDEN)                # value_layer.bias
    return W1, b1, Wa, ba, Wv, bv


def pack_params(torch_params):
    """One-time fusion/layout for the kernel (hoisted out of the forward)."""
    W1, b1, Wa, ba, Wv, bv = torch_params
    w1_k = W1                                              # (128, 8)
    b1_k = b1.reshape(HIDDEN, 1)                           # (128, 1)
    wh_k = jnp.concatenate([Wa, Wv], axis=0)               # (5, 128)
    bh_k = jnp.concatenate([ba, bv], axis=0).reshape(HEAD_DIM, 1)  # (5, 1)
    return w1_k, b1_k, wh_k, bh_k


def _reference(state, torch_params):
    W1, b1, Wa, ba, Wv, bv = torch_params
    h = jnp.maximum(state @ W1.T + b1, 0.0)
    value = h @ Wv.T + bv
    probs = jax.nn.softmax(h @ Wa.T + ba, axis=-1)
    return probs, value


if __name__ == "__main__":
    key = jax.random.PRNGKey(0)
    pkey, skey, akey = jax.random.split(key, 3)

    torch_params = init_params(pkey)
    packed = pack_params(torch_params)   # fused once, reused every forward call

    # batch of 8-dim states (LunarLander observation size)
    B = 256
    state = jax.random.normal(skey, (B, IN_DIM), jnp.float32)

    probs, value = actor_critic_forward(state, packed)
    probs = jax.block_until_ready(probs)
    value = jax.block_until_ready(value)

    probs_ref, value_ref = _reference(state, torch_params)
    assert probs.shape == (B, N_ACTIONS) and value.shape == (B, 1)
    assert jnp.allclose(probs, probs_ref, atol=1e-5), "probs mismatch"
    assert jnp.allclose(value, value_ref, atol=1e-5), "value mismatch"
    assert jnp.allclose(jnp.sum(probs, axis=-1), 1.0, atol=1e-5)

    # also exercise the ragged-batch (padded) path
    B2 = 37
    state2 = jax.random.normal(jax.random.PRNGKey(7), (B2, IN_DIM), jnp.float32)
    p2, v2 = actor_critic_forward(state2, packed)
    p2 = jax.block_until_ready(p2)
    p2_ref, v2_ref = _reference(state2, torch_params)
    assert jnp.allclose(p2, p2_ref, atol=1e-5) and jnp.allclose(v2, v2_ref, atol=1e-5)

    # Categorical sampling + log_prob bookkeeping (glue, matches torch forward)
    log_probs_all = jnp.log(probs)
    action = jax.random.categorical(akey, log_probs_all, axis=-1)   # (B,)
    logprob = jnp.take_along_axis(log_probs_all, action[:, None], axis=-1)[:, 0]
    jax.block_until_ready(action)
    jax.block_until_ready(logprob)

    print("KERNEL_OK")
</pallas_src>

<mosaic_0001>
module attributes {stable_mosaic.version = 11 : i64} {
  func.func @_actor_critic_kernel(%arg0: i32, %arg1: memref<8x128xf32, #tpu.memory_space<vmem>>, %arg2: memref<128x8xf32, #tpu.memory_space<vmem>>, %arg3: memref<128x1xf32, #tpu.memory_space<vmem>>, %arg4: memref<5x128xf32, #tpu.memory_space<vmem>>, %arg5: memref<5x1xf32, #tpu.memory_space<vmem>>, %arg6: memref<5x128xf32, #tpu.memory_space<vmem>>) attributes {dimension_semantics = [#tpu.dimension_semantics<parallel>], iteration_bounds = array<i64: 2>, scalar_prefetch = 0 : i64, scratch_operands = 0 : i64, tpu.core_type = #tpu.core_type<tc>, window_params = [{transform_indices = @transform_0, window_bounds = array<i64: 8, 128>}, {pipeline_mode = #tpu.pipeline_mode<synchronous>, transform_indices = @transform_1, window_bounds = array<i64: 128, 8>}, {pipeline_mode = #tpu.pipeline_mode<synchronous>, transform_indices = @transform_2, window_bounds = array<i64: 128, 1>}, {pipeline_mode = #tpu.pipeline_mode<synchronous>, transform_indices = @transform_3, window_bounds = array<i64: 5, 128>}, {pipeline_mode = #tpu.pipeline_mode<synchronous>, transform_indices = @transform_4, window_bounds = array<i64: 5, 1>}, {transform_indices = @transform_5, window_bounds = array<i64: 5, 128>}]} {
    %c0 = arith.constant 0 : index
    %c0_0 = arith.constant 0 : index
    %0 = vector.load %arg1[%c0, %c0_0] : memref<8x128xf32, #tpu.memory_space<vmem>>, vector<8x128xf32>
    %c0_1 = arith.constant 0 : index
    %c0_2 = arith.constant 0 : index
    %1 = vector.load %arg2[%c0_1, %c0_2] : memref<128x8xf32, #tpu.memory_space<vmem>>, vector<128x8xf32>
    %cst = arith.constant dense<0.000000e+00> : vector<128x128xf32>
    %2 = tpu.matmul %1, %0, %cst {dimension_numbers = #tpu.dot_dimension_numbers<[1], [0], [0], [1], [0, 0, 1, 1], [], []>} : vector<128x8xf32>, vector<8x128xf32>, vector<128x128xf32> -> vector<128x128xf32>
    %c0_3 = arith.constant 0 : index
    %c0_4 = arith.constant 0 : index
    %3 = vector.load %arg3[%c0_3, %c0_4] : memref<128x1xf32, #tpu.memory_space<vmem>>, vector<128x1xf32>
    %4 = vector.broadcast %3 : vector<128x1xf32> to vector<128x128xf32>
    %5 = arith.addf %2, %4 : vector<128x128xf32>
    %cst_5 = arith.constant 0.000000e+00 : f32
    %6 = vector.broadcast %cst_5 : f32 to vector<128x128xf32>
    %7 = arith.maximumf %5, %6 : vector<128x128xf32>
    %c0_6 = arith.constant 0 : index
    %c0_7 = arith.constant 0 : index
    %8 = vector.load %arg4[%c0_6, %c0_7] : memref<5x128xf32, #tpu.memory_space<vmem>>, vector<5x128xf32>
    %cst_8 = arith.constant dense<0.000000e+00> : vector<5x128xf32>
    %9 = tpu.matmul %8, %7, %cst_8 {dimension_numbers = #tpu.dot_dimension_numbers<[1], [0], [0], [1], [0, 0, 1, 1], [], []>} : vector<5x128xf32>, vector<128x128xf32>, vector<5x128xf32> -> vector<5x128xf32>
    %c0_9 = arith.constant 0 : index
    %c0_10 = arith.constant 0 : index
    %10 = vector.load %arg5[%c0_9, %c0_10] : memref<5x1xf32, #tpu.memory_space<vmem>>, vector<5x1xf32>
    %11 = vector.broadcast %10 : vector<5x1xf32> to vector<5x128xf32>
    %12 = arith.addf %9, %11 : vector<5x128xf32>
    %13 = tpu.iota {dimensions = array<i32: 0>} : vector<5x128xi32>
    %c4_i32 = arith.constant 4 : i32
    %14 = vector.broadcast %c4_i32 : i32 to vector<5x128xi32>
    %15 = arith.cmpi slt, %13, %14 : vector<5x128xi32>
    %cst_11 = arith.constant 0xFF800000 : f32
    %16 = vector.broadcast %cst_11 : f32 to vector<5x128xf32>
    %17 = arith.select %15, %12, %16 : vector<5x128xi1>, vector<5x128xf32>
    %cst_12 = arith.constant dense<0xFF800000> : vector<128xf32>
    %18 = vector.multi_reduction <maximumf>, %17, %cst_12 [0] : vector<5x128xf32> to vector<128xf32>
    %19 = vector.shape_cast %18 : vector<128xf32> to vector<1x128xf32>
    %20 = vector.broadcast %19 : vector<1x128xf32> to vector<5x128xf32>
    %21 = arith.subf %12, %20 : vector<5x128xf32>
    %cst_13 = arith.constant 0.000000e+00 : f32
    %22 = vector.broadcast %cst_13 : f32 to vector<5x128xf32>
    %23 = arith.select %15, %21, %22 : vector<5x128xi1>, vector<5x128xf32>
    %24 = math.exp %23 : vector<5x128xf32>
    %cst_14 = arith.constant 0.000000e+00 : f32
    %25 = vector.broadcast %cst_14 : f32 to vector<5x128xf32>
    %26 = arith.select %15, %24, %25 : vector<5x128xi1>, vector<5x128xf32>
    %cst_15 = arith.constant dense<0.000000e+00> : vector<128xf32>
    %27 = vector.multi_reduction <add>, %26, %cst_15 [0] : vector<5x128xf32> to vector<128xf32>
    %28 = vector.shape_cast %27 : vector<128xf32> to vector<1x128xf32>
    %29 = tpu.reciprocal %28 {approx = true} : vector<1x128xf32> -> vector<1x128xf32>
    %30 = arith.mulf %28, %29 : vector<1x128xf32>
    %cst_16 = arith.constant 2.000000e+00 : f32
    %31 = vector.broadcast %cst_16 : f32 to vector<1x128xf32>
    %32 = arith.subf %31, %30 : vector<1x128xf32>
    %33 = arith.mulf %29, %32 : vector<1x128xf32>
    %34 = vector.broadcast %33 : vector<1x128xf32> to vector<5x128xf32>
    %35 = arith.mulf %26, %34 : vector<5x128xf32>
    %36 = arith.select %15, %35, %12 : vector<5x128xi1>, vector<5x128xf32>
    %c0_17 = arith.constant 0 : index
    %c0_18 = arith.constant 0 : index
    %37 = vector.load %arg6[%c0_17, %c0_18] : memref<5x128xf32, #tpu.memory_space<vmem>>, vector<5x128xf32>
    tpu.vector_store %arg6[%c0_17, %c0_18], %36 {strides = array<i32>} : memref<5x128xf32, #tpu.memory_space<vmem>>, vector<5x128xf32>,
    return
  }
  func.func @transform_0(%arg0: i32) -> (i32, i32) {
    %c0_i32 = arith.constant 0 : i32
    %c0_i32_0 = arith.constant 0 : i32
    return %c0_i32, %arg0 : i32, i32
  }
  func.func @transform_1(%arg0: i32) -> (i32, i32) {
    %c0_i32 = arith.constant 0 : i32
    %c0_i32_0 = arith.constant 0 : i32
    %c0_i32_1 = arith.constant 0 : i32
    return %c0_i32, %c0_i32_0 : i32, i32
  }
  func.func @transform_2(%arg0: i32) -> (i32, i32) {
    %c0_i32 = arith.constant 0 : i32
    %c0_i32_0 = arith.constant 0 : i32
    %c0_i32_1 = arith.constant 0 : i32
    return %c0_i32, %c0_i32_0 : i32, i32
  }
  func.func @transform_3(%arg0: i32) -> (i32, i32) {
    %c0_i32 = arith.constant 0 : i32
    %c0_i32_0 = arith.constant 0 : i32
    %c0_i32_1 = arith.constant 0 : i32
    return %c0_i32, %c0_i32_0 : i32, i32
  }
  func.func @transform_4(%arg0: i32) -> (i32, i32) {
    %c0_i32 = arith.constant 0 : i32
    %c0_i32_0 = arith.constant 0 : i32
    %c0_i32_1 = arith.constant 0 : i32
    return %c0_i32, %c0_i32_0 : i32, i32
  }
  func.func @transform_5(%arg0: i32) -> (i32, i32) {
    %c0_i32 = arith.constant 0 : i32
    %c0_i32_0 = arith.constant 0 : i32
    return %c0_i32, %arg0 : i32, i32
  }
}

</mosaic_0001>

<bundles_post_ra>
// kernel: _forward_padded.1
= control target key start
LH: loop header
LB: loop body
LE: loop exit
PB: predicated region body
PF: predicated region fallthrough
CT: control target
= control target key end

     0   :  { %10 = vsyncpa [#allocation3], 0  ;;  %s1235_s0 = inlined_call_operand.vmem [shape: f32[8,256], index: 0, kind: input, shape index: {}]   ;;  %s1236_s1 = inlined_call_operand.vmem [shape: f32[128,8], index: 1, kind: input, shape index: {}]   ;;  %s1237_s2 = inlined_call_operand.vmem [shape: f32[128,1], index: 2, kind: input, shape index: {}]   ;;  %s1238_s3 = inlined_call_operand.vmem [shape: f32[5,128], index: 3, kind: input, shape index: {}]   ;;  %s1239_s4 = inlined_call_operand.vmem [shape: f32[5,1], index: 4, kind: input, shape index: {}]   ;;  %s1240_s5 = inlined_call_operand.hbm [shape: f32[5,256], index: 5, kind: output, shape index: {}]  }
   0x1   :  { %12 = vsyncpa [#allocation3 + $0x1], 0  ;;  %s989_s18 = smov 0   ;;  %s991_s19 = smov 0  }
   0x2   :  { %s993_s20 = smov 0   ;;  %s995_s21 = smov 0  }
   0x3 LB: > { %s1010_s22 = sadd.s32 4294967295, %s953_s21   ;;  %s724_s23 = sadd.s32 4294967294, %s953_s21   ;;  %s953_s21 = sphi %s995_s21, %s1246_s21   ;;  %s949_s20 = sphi %s993_s20, %s1245_s20   ;;  %s945_s19 = sphi %s991_s19, %s1244_s19   ;;  %s941_s18 = sphi %s989_s18, %s1243_s18  }
   0x4   : > { %s1014_s24 = sadd.s32 1, %s953_s21   ;;  %s135_s25 = sadd.s32 1, %s949_s20 }
   0x5   : > { %s132_s26 = ssub.s32 %s953_s21, %s1014_s24  ;;  %p145_p0 = scmp.ne.s32.totalorder %s949_s20, %s945_s19 }
   0x6   : > { %p133_p1 = scmp.eq.s32.totalorder %s132_s26, 0  ;;  %p146_p2 = scmp.eq.s32.totalorder %s1010_s22, 1 }
   0x7   : > { %p151_p3 = scmp.ne.s32.totalorder %s945_s19, %s941_s18  ;;  %p152_p4 = scmp.eq.s32.totalorder %s724_s23, 1 }
   0x8   : > { %s1025_s27 = scalar_select %p133_p1, %s949_s20, %s135_s25  }
   0x9   : > { %p1027_p5 = por %p146_p2, %p145_p0  ;;  %p1031_p6 = por %p152_p4, %p151_p3 }
   0xa   : > { %p727_p7 = scmp.ge.s32.totalorder %s953_s21, 1  ;;  %p189_p8 = scmp.lt.s32.totalorder %s953_s21, 3 }
   0xc   : > { %p190_p9 = pnand %p727_p7, %p189_p8 }
   0xd   : > { %p216_p10 = scmp.lt.s32.totalorder (!%p190_p9), %s1010_s22, 1  ;;  %s213_s14 = sand.u32 (!%p190_p9), 1, %s945_s19  }
   0xe   : > { %193 = sbr.rel (%p190_p9) target bundleno = 560 (0x230), region = 40  ;;  %s728_s15 = sshll.u32 (!%p190_p9), %s213_s14, 3 }
   0xf   : > { %s747_s16 = sshll.u32 (!%p190_p9), %s1010_s22, 7  ;;  %s215_s17 = scalar_lea.vmem (!%p190_p9), [#allocation2], %s728_s15 }
  0x10   : > { %s665_s23 = sshll.u32 (!%p190_p9), %s215_s17, 4  ;;  %s1199_s30 = scalar_lea.hbm (!%p190_p9), %s1240_s5, %s747_s16  ;;  %s666_s23 = int_to_ptr.vmem [resolvable:$true] %s665_s23 }
  0x11   : > { %s652_s6 = scalar_lea.sflag (!%p190_p9), [#allocation3], %s213_s14 }
  0x13   : > { %v221_v0 = vld [vmem:[%s1236_s1] sm:$0xff]  ;;  %vm333_vm0 = vcmask 64512   ;;  %v955_v1 = vmov 0   ;;  %s217_s7 = scalar_select %p216_p10, %s1010_s22, 1  ;;  %v252_v2 = vld [vmem:[%s1237_s2 + $0x78] sm:$0xff]  ;;  %v250_v3 = vld [vmem:[%s1237_s2 + $0x68] sm:$0xff] }
  0x14   : > { %786 = vmatprep.mubr.msk.f32.mxu0 %vm333_vm0, %v221_v0  ;;  %887 = vset.pattern.permute.xlu0 %v955_v1  ;;  %v222_v5 = vld [vmem:[%s1236_s1 + $0x8] sm:$0xff]  ;;  %v223_v6 = vld [vmem:[%s1236_s1 + $0x10] sm:$0xff]  ;;  %v249_v8 = vld [vmem:[%s1237_s2 + $0x60] sm:$0xff]  ;;  %v956_v35 = vmov 0.0   ;;  %vm957_vm1 = vmmov 0   ;;  %vm624_vm3 = vcmask 1044480  }
  0x15   : > { %888 = vset.pattern.permute.xlu1 %v955_v1  ;;  %s729_s8 = sshll.u32 %s217_s7, 3  ;;  %330 = vperm.xlu0 %887, %v252_v2   ;;  %v251_v7 = vld [vmem:[%s1237_s2 + $0x70] sm:$0xff]  ;;  %v224_v9 = vld [vmem:[%s1236_s1 + $0x18] sm:$0xff]  ;;  %v225_v10 = vld [vmem:[%s1236_s1 + $0x20] sm:$0xff]  ;;  %s893_s7 = scalar_lea.vmem %s666_s23, 128 }
  0x16   : > { %s219_s11 = scalar_lea.vmem %s1235_s0, %s729_s8  ;;  %320 = vperm.xlu1 %888, %v250_v3   ;;  %v248_v11 = vld [vmem:[%s1237_s2 + $0x58] sm:$0xff]  ;;  %v247_v12 = vld [vmem:[%s1237_s2 + $0x50] sm:$0xff]  ;;  %v226_v13 = vld [vmem:[%s1236_s1 + $0x28] sm:$0xff]  ;;  %810 = vmatprep.subr.mxu1 %v956_v35  ;;  %p894_p11 = scmp.ne.s32.totalorder %s666_s23, %s893_s7 }
  0x17   : > { %v220_v4 = vld [vmem:[%s219_s11] sm:$0xff]  ;;  %v227_v14 = vld [vmem:[%s1236_s1 + $0x30] sm:$0xff]  ;;  %v246_v15 = vld [vmem:[%s1237_s2 + $0x48] sm:$0xff]  ;;  %842 = vmatprep.mubr.msk.f32.mxu1 %vm957_vm1, %v956_v35  ;;  %s958_s8 = smov [#allocation2]  }
  0x18   : > { %784 = vmatprep.subr.mxu0 %v220_v4  ;;  %v245_v16 = vld [vmem:[%s1237_s2 + $0x40] sm:$0xff]  ;;  %v228_v17 = vld [vmem:[%s1236_s1 + $0x38] sm:$0xff]  ;;  %v243_v20 = vld [vmem:[%s1237_s2 + $0x30] sm:$0xff]  ;;  %p895_p12 = pnand %p894_p11, %p1027_p5  ;;  %s897_s22 = sshll.u32 %s958_s8, 4  ;;  %s898_s22 = int_to_ptr.vmem [resolvable:$false] %s897_s22 }
  0x19   : > { %785 = vmatpush3.msra.mxu0 %v220_v4  ;;  %325 = vperm.xlu0 %887, %v251_v7   ;;  %v229_v18 = vld [vmem:[%s1236_s1 + $0x40] sm:$0xff]  ;;  %v244_v19 = vld [vmem:[%s1237_s2 + $0x38] sm:$0xff]  ;;  %v230_v21 = vld [vmem:[%s1236_s1 + $0x48] sm:$0xff]  ;;  %s899_s9 = scalar_lea.vmem %s898_s22, 256  ;;  %p900_p0 = scmp.lt.s32.totalorder %s666_s23, %s898_s22 }
  0x1a   : > { %787 = vmatmul.mubr.msk.f32.vlgmr.msra.gmra.mxu0 %vm333_vm0, %v222_v5  ;;  %315 = vperm.xlu1 %888, %v249_v8   ;;  %v231_v22 = vld [vmem:[%s1236_s1 + $0x50] sm:$0xff]  ;;  %v242_v23 = vld [vmem:[%s1237_s2 + $0x28] sm:$0xff]  ;;  %v241_v24 = vld [vmem:[%s1237_s2 + $0x20] sm:$0xff]  ;;  %p896_p13 = pneg %p895_p12  ;;  %p901_p1 = scmp.lt.s32.totalorder %s899_s9, %s893_s7 }
  0x1b   : > { %789 = vmatprep.mubr.msk.f32.mxu0 %vm333_vm0, %v223_v6  ;;  %v232_v25 = vld [vmem:[%s1236_s1 + $0x58] sm:$0xff]  ;;  %v233_v26 = vld [vmem:[%s1236_s1 + $0x60] sm:$0xff]  ;;  %v239_v28 = vld [vmem:[%s1237_s2 + $0x10] sm:$0xff] }
  0x1c   : > { %v240_v27 = vld [vmem:[%s1237_s2 + $0x18] sm:$0xff]  ;;  %v234_v29 = vld [vmem:[%s1236_s1 + $0x68] sm:$0xff]  ;;  %v235_v30 = vld [vmem:[%s1236_s1 + $0x70] sm:$0xff]  ;;  %p902_p2 = por %p901_p1, %p900_p0 }
  0x1d   : > { %310 = vperm.xlu0 %887, %v248_v11   ;;  %v238_v31 = vld [vmem:[%s1237_s2 + $0x8] sm:$0xff]  ;;  %v237_v32 = vld [vmem:[%s1237_s2] sm:$0xff]  ;;  %v236_v33 = vld [vmem:[%s1236_s1 + $0x78] sm:$0xff] }
  0x1e   : > { %790 = vmatmul.mubr.msk.f32.gmra.mxu0 %vm333_vm0, %v224_v9  ;;  %305 = vperm.xlu1 %888, %v247_v12   ;;  %v544_v34 = vld [vmem:[%s1239_s4] sm:$0x1f]  ;;  %p903_p3 = pnand %p902_p2, %p896_p13 }
  0x1f   : > { %792 = vmatprep.mubr.msk.f32.mxu0 %vm333_vm0, %v225_v10 }
  0x21   : > { %300 = vperm.xlu0 %887, %v246_v15  }
  0x22   : > { %793 = vmatmul.mubr.msk.f32.gmra.mxu0 %vm333_vm0, %v226_v13  ;;  %295 = vperm.xlu1 %888, %v245_v16  }
  0x23   : > { %795 = vmatprep.mubr.msk.f32.mxu0 %vm333_vm0, %v227_v14 }
  0x25   : > { %290 = vperm.xlu0 %887, %v244_v19  }
  0x26   : > { %796 = vmatmul.mubr.msk.f32.gmra.mxu0 %vm333_vm0, %v228_v17  ;;  %285 = vperm.xlu1 %888, %v243_v20  }
  0x27   : > { %798 = vmatprep.mubr.msk.f32.mxu0 %vm333_vm0, %v229_v18 }
  0x29   : > { %280 = vperm.xlu0 %887, %v242_v23  }
  0x2a   : > { %799 = vmatmul.mubr.msk.f32.gmra.mxu0 %vm333_vm0, %v230_v21  ;;  %275 = vperm.xlu1 %888, %v241_v24  }
  0x2b   : > { %801 = vmatprep.mubr.msk.f32.mxu0 %vm333_vm0, %v231_v22 }
  0x2d   : > { %270 = vperm.xlu0 %887, %v240_v27  }
  0x2e   : > { %802 = vmatmul.mubr.msk.f32.gmra.mxu0 %vm333_vm0, %v232_v25  ;;  %265 = vperm.xlu1 %888, %v239_v28  }
  0x2f   : > { %804 = vmatprep.mubr.msk.f32.mxu0 %vm333_vm0, %v233_v26 }
  0x31   : > { %260 = vperm.xlu0 %887, %v238_v31  }
  0x32   : > { %805 = vmatmul.mubr.msk.f32.gmra.mxu0 %vm333_vm0, %v234_v29  ;;  %255 = vperm.xlu1 %888, %v237_v32  }
  0x33   : > { %807 = vmatprep.mubr.msk.f32.mxu0 %vm333_vm0, %v235_v30 }
  0x35   : > { %547 = vperm.xlu0 %887, %v544_v34  }
  0x36   : > { %808 = vmatmul.mubr.msk.f32.gmra.mxu0 %vm333_vm0, %v236_v33 }
  0x90   : > { %v331_v41 = vpop.permute.xlu0 %330 }
  0x91   : > { %v321_v43 = vpop.permute.xlu1 %320 }
  0x94   : > { %v326_v46 = vpop.permute.xlu0 %325 }
  0x95   : > { %v316_v48 = vpop.permute.xlu1 %315 }
  0x98   : > { %v311_v51 = vpop.permute.xlu0 %310 }
  0x99   : > { %v306_v53 = vpop.permute.xlu1 %305 }
  0x9c   : > { %v301_v56 = vpop.permute.xlu0 %300 }
  0x9d   : > { %v296_v59 = vpop.permute.xlu1 %295 }
  0xa0   : > { %v291_v2 = vpop.permute.xlu0 %290 }
  0xa1   : > { %v286_v5 = vpop.permute.xlu1 %285 }
  0xa4   : > { %v281_v10 = vpop.permute.xlu0 %280 }
  0xa5   : > { %v276_v13 = vpop.permute.xlu1 %275 }
  0xa8   : > { %v271_v18 = vpop.permute.xlu0 %270 }
  0xa9   : > { %v266_v21 = vpop.permute.xlu1 %265 }
  0xac   : > { %v261_v26 = vpop.permute.xlu0 %260 }
  0xad   : > { %v256_v29 = vpop.permute.xlu1 %255 }
  0xda   : > { %v1159_v36 = vpop.f32.mrf.mxu0 }
  0xdb   : > { %v454_v30 = vadd.f32 %v1159_v36, %v261_v26  ;;  %v543_v36 = vld [vmem:[%s1238_s3] sm:$0x1f] }
  0xdc   : > { %v1161_v37 = vpop.f32.mrf.mxu0 }
  0xdd   : > { %v449_v32 = vadd.f32 %v1161_v37, %v256_v29  ;;  %v528_v34 = vmax.f32 %v454_v30, 0.0 }
  0xde   : > { %v1163_v38 = vpop.f32.mrf.mxu0 }
  0xdf   : > { %v464_v24 = vadd.f32 %v1163_v38, %v271_v18  ;;  %v527_v38 = vmax.f32 %v449_v32, 0.0 }
  0xe0   : > { %v1165_v39 = vpop.f32.mrf.mxu0 }
  0xe1   : > { %v459_v27 = vadd.f32 %v1165_v39, %v266_v21  ;;  %v530_v31 = vmax.f32 %v464_v24, 0.0  ;;  %v620_v39 = vlaneseq }
  0xe2   : > { %v794_v40 = vpop.f32.mrf.mxu0 }
  0xe3   : > { %v474_v19 = vadd.f32 %v794_v40, %v281_v10  ;;  %v529_v33 = vmax.f32 %v459_v27, 0.0  ;;  %v621_v37 = vshrl.u32 %v620_v39, 7  ;;  %v548_v40 = vpop.permute.xlu0 %547 }
  0xe4   : > { %v468_v42 = vpop.f32.mrf.mxu0 }
  0xe5   : > { %v469_v22 = vadd.f32 %v468_v42, %v276_v13  ;;  %v532_v25 = vmax.f32 %v474_v19, 0.0  ;;  %vm622_vm2 = vcmp.lt.s32.totalorder %v621_v37, 4 }
  0xe6   : > { %v797_v44 = vpop.f32.mrf.mxu0 }
  0xe7   : > { %v484_v14 = vadd.f32 %v797_v44, %v291_v2  ;;  %v531_v28 = vmax.f32 %v469_v22, 0.0 }
  0xe8   : > { %v478_v45 = vpop.f32.mrf.mxu0 }
  0xe9   : > { %v479_v16 = vadd.f32 %v478_v45, %v286_v5  ;;  %v534_v20 = vmax.f32 %v484_v14, 0.0 }
  0xea   : > { %v800_v47 = vpop.f32.mrf.mxu0 }
  0xeb   : > { %v494_v8 = vadd.f32 %v800_v47, %v301_v56  ;;  %v533_v23 = vmax.f32 %v479_v16, 0.0 }
  0xec   : > { %v488_v49 = vpop.f32.mrf.mxu0 }
  0xed   : > { %v489_v11 = vadd.f32 %v488_v49, %v296_v59  ;;  %v536_v15 = vmax.f32 %v494_v8, 0.0 }
  0xee   : > { %v803_v50 = vpop.f32.mrf.mxu0 }
  0xef   : > { %v504_v3 = vadd.f32 %v803_v50, %v311_v51  ;;  %v535_v17 = vmax.f32 %v489_v11, 0.0 }
  0xf0   : > { %v498_v52 = vpop.f32.mrf.mxu0 }
  0xf1   : > { %v499_v6 = vadd.f32 %v498_v52, %v306_v53  ;;  %v538_v9 = vmax.f32 %v504_v3, 0.0 }
  0xf2   : > { %v806_v54 = vpop.f32.mrf.mxu0 }
  0xf3   : > { %v514_v61 = vadd.f32 %v806_v54, %v321_v43  ;;  %v537_v12 = vmax.f32 %v499_v6, 0.0 }
  0xf4   : > { %v508_v55 = vpop.f32.mrf.mxu0 }
  0xf5   : > { %v509_v0 = vadd.f32 %v508_v55, %v316_v48  ;;  %v540_v4 = vmax.f32 %v514_v61, 0.0 }
  0xf6   : > { %v809_v57 = vpop.f32.mrf.mxu0 }
  0xf7   : > { %v524_v58 = vadd.f32 %v809_v57, %v331_v41  ;;  %v539_v7 = vmax.f32 %v509_v0, 0.0 }
  0xf8   : > { %v518_v60 = vpop.f32.mrf.mxu0 }
  0xf9   : > { %v542_v62 = vmax.f32 %v524_v58, 0.0  ;;  %v519_v63 = vadd.f32 %v518_v60, %v326_v46 }
  0xfb   : > { %v541_v1 = vmax.f32 %v519_v63, 0.0  ;;  %811 = vmatpush3.msra.mxu1 %v542_v62 }
  0xfc   : > { %812 = vmatprep.subr.mxu1 %v956_v35 }
  0xfd   : > { %813 = vmatpush3.msra.mxu1 %v541_v1 }
  0xfe   : > { %814 = vmatprep.subr.mxu1 %v956_v35 }
  0xff   : > { %815 = vmatpush3.msra.mxu1 %v540_v4 }
 0x100   : > { %816 = vmatprep.subr.mxu1 %v956_v35 }
 0x101   : > { %817 = vmatpush3.msra.mxu1 %v539_v7 }
 0x102   : > { %818 = vmatprep.subr.mxu1 %v956_v35 }
 0x103   : > { %819 = vmatpush3.msra.mxu1 %v538_v9 }
 0x104   : > { %820 = vmatprep.subr.mxu1 %v956_v35 }
 0x105   : > { %821 = vmatpush3.msra.mxu1 %v537_v12 }
 0x106   : > { %822 = vmatprep.subr.mxu1 %v956_v35 }
 0x107   : > { %823 = vmatpush3.msra.mxu1 %v536_v15 }
 0x108   : > { %824 = vmatprep.subr.mxu1 %v956_v35 }
 0x109   : > { %825 = vmatpush3.msra.mxu1 %v535_v17 }
 0x10a   : > { %826 = vmatprep.subr.mxu1 %v956_v35 }
 0x10b   : > { %827 = vmatpush3.msra.mxu1 %v534_v20 }
 0x10c   : > { %828 = vmatprep.subr.mxu1 %v956_v35 }
 0x10d   : > { %829 = vmatpush3.msra.mxu1 %v533_v23 }
 0x10e   : > { %830 = vmatprep.subr.mxu1 %v956_v35 }
 0x10f   : > { %831 = vmatpush3.msra.mxu1 %v532_v25 }
 0x110   : > { %832 = vmatprep.subr.mxu1 %v956_v35 }
 0x111   : > { %833 = vmatpush3.msra.mxu1 %v531_v28 }
 0x112   : > { %834 = vmatprep.subr.mxu1 %v956_v35 }
 0x113   : > { %835 = vmatpush3.msra.mxu1 %v530_v31 }
 0x114   : > { %836 = vmatprep.subr.mxu1 %v956_v35 }
 0x115   : > { %837 = vmatpush3.msra.mxu1 %v529_v33 }
 0x116   : > { %838 = vmatprep.subr.mxu1 %v956_v35 }
 0x117   : > { %839 = vmatpush3.msra.mxu1 %v528_v34 }
 0x118   : > { %840 = vmatprep.subr.mxu1 %v956_v35 }
 0x119   : > { %841 = vmatpush3.msra.mxu1 %v527_v38 }
 0x11a   : > { %843 = vmatmul.mubr.f32.vlgmr.msra.gmra.mxu1 %v543_v36 }
 0x1da   : > { %v616_v41 = vpop.f32.mrf.mxu1 }
 0x1db   : > { %v617_v42 = vadd.f32 %v616_v41, %v548_v40 }
 0x1dc   : > { %v844_v43 = vpop.f32.mrf.mxu1 }
 0x1dd   : > { %v623_v44 = vsel %vm622_vm2, %v617_v42, -inf }
 0x1de   : > { %v625_v45 = vsel %vm624_vm3, %v623_v44, -inf }
 0x1df   : > { %v626_v46 = vrot.slane %v625_v45, 4 }
 0x1e1   : > { %v627_v47 = vmax.f32 %v625_v45, %v626_v46 }
 0x1e3   : > { %v628_v48 = vrot.slane %v627_v47, 2 }
 0x1e5   : > { %v629_v49 = vmax.f32 %v627_v47, %v628_v48 }
 0x1e7   : > { %v630_v50 = vrot.slane %v629_v49, 1 }
 0x1e9   : > { %v631_v35 = vmax.f32 %v629_v49, %v630_v50 }
 0x1eb   : > { %v632_v51 = vsub.f32 %v617_v42, %v631_v35 }
 0x1ed   : > { %v633_v52 = vsel %vm622_vm2, %v632_v51, 0.0 }
 0x1ee   : > { %v634_v53 = vmul.f32 1.442695, %v633_v52 }
 0x1f0   : > { %889 = vpow2.f32 %v634_v53 }
 0x1fd   : > { %v890_v54 = vpop.eup %889 }
 0x1fe   : > { %v636_v55 = vsel %vm622_vm2, %v890_v54, 0.0 }
 0x1ff   : > { %v637_v56 = vsel %vm624_vm3, %v636_v55, 0.0 }
 0x200   : > { %v638_v57 = vrot.slane %v637_v56, 4 }
 0x202   : > { %v639_v58 = vadd.f32 %v638_v57, %v637_v56 }
 0x204   : > { %v640_v59 = vrot.slane %v639_v58, 2 }
 0x206   : > { %v641_v60 = vadd.f32 %v640_v59, %v639_v58 }
 0x208   : > { %v642_v61 = vrot.slane %v641_v60, 1 }
 0x20a   : > { %v643_v62 = vadd.f32 %v642_v61, %v641_v60 }
 0x20c   : > { %891 = vrcp.f32 %v643_v62 }
 0x219   : > { %v892_v63 = vpop.eup %891 }
 0x21a   : > { %v645_v0 = vmul.f32 %v892_v63, %v643_v62 }
 0x21c   : > { %v646_v1 = vsub.f32 2.0, %v645_v0 }
 0x21e   : > { %v647_v2 = vmul.f32 %v892_v63, %v646_v1 }
 0x220   : > { %v648_v3 = vmul.f32 %v647_v2, %v636_v55 }
 0x222   : > { %v649_v4 = vsel %vm622_vm2, %v648_v3, %v617_v42 }
 0x223   : > { %650 = vst [vmem:[%s215_s17] sm:$0x1f] %v649_v4 }
 0x224   : > { %906 = shalt.err (!%p903_p3)
}
 0x225   : > { %s907_s10 = scalar_lea.hbm %s1199_s30, 128  ;;  %s911_s13 = scalar_lea.hbm %s1240_s5, 256 }
 0x226   : > { %p908_p4 = scmp.ne.s32.totalorder %s1199_s30, %s907_s10  ;;  %p912_p9 = scmp.lt.s32.totalorder %s1199_s30, %s1240_s5 }
 0x227   : > { %p913_p10 = scmp.lt.s32.totalorder %s911_s13, %s907_s10 }
 0x228   : > { %p909_p7 = pnand %p908_p4, %p1027_p5 }
 0x229   : > { %p914_p11 = por %p913_p10, %p912_p9 }
 0x22a   : > { %p910_p8 = pneg %p909_p7 }
 0x22c   : > { %p915_p12 = pnand %p914_p11, %p910_p8 }
 0x22e   : > { %918 = shalt.err (!%p915_p12)
}
 0x22f   : > { %845 = dma.vmem_to_hbm [thread:$0]  (%p1027_p5), %s666_s23, 128, %s1199_s30, %s652_s6  }
 0x230 PF: > { %p851_p13 = scmp.ge.s32.totalorder %s953_s21, 2  ;;  %s677_s16 = sand.u32 1, %s941_s18  }
 0x231   : > { %s678_s17 = scalar_lea.sflag [#allocation3], %s677_s16 }
 0x232   : > { %p848_p0 = pnand %p851_p13, %p1031_p6 }
 0x234   : > { %p849_p1 = pneg %p848_p0 }
 0x236   : > { %936 = dma.done.wait (%p849_p1), %s678_s17, 128  }
 0x237   : > { %938 = vsyncadd (%p849_p1), %s678_s17, 4294967168  ;;  %p15_p2 = scmp.ge.s32.totalorder %s1014_s24, 4   ;;  %s1243_s18 = smov %s945_s19 }
 0x238   : > { %s1244_s19 = smov %s949_s20  ;;  %s1245_s20 = smov %s1025_s27 }
 0x239   : > { %s1246_s21 = smov %s1014_s24  ;;  %17 = sbr.rel (!%p15_p2) target bundleno = 3 (0x3), region = 75 }
 0x23e   :  { %683 = vsyncpa [#allocation3], 1 }
 0x23f   :  { %685 = vsyncpa [#allocation3 + $0x1], 1 }

</bundles_post_ra>
